<compile_context>
chip_gen: v7x
topology: tpu7x:2x2x1
jax: 0.10.0
libtpu: 0.0.40
codegen_flags: <defaults>
</compile_context>

<pallas_src>
import functools

import jax
import jax.numpy as jnp
from jax.experimental import pallas as pl
from jax.experimental.pallas import tpu as pltpu


# ----------------------------------------------------------------------------
# Pallas kernel: one time-chunk of the LSTM recurrence + predictor head
# ----------------------------------------------------------------------------
def _dkt_lstm_kernel(xp_ref, qc_ref, whh_ref, wp_ref, out_ref, h_sc, c_sc):
    """xp_ref:  (T_CHUNK, Bs, 4H)  precomputed x @ W_ih + b_gates (time-major)
       qc_ref:  (Bs, T_CHUNK)      precomputed q_next @ w_pred_q + b_pred
       whh_ref: (H, 4H)            recurrent weights
       wp_ref:  (1, H)             hidden-side predictor row
       out_ref: (Bs, T_CHUNK)      predicted scores (lane-dense)
       h_sc/c_sc: (Bs, H)          LSTM state, persists across time chunks."""
    chunk = pl.program_id(1)

    @pl.when(chunk == 0)
    def _():
        h_sc[...] = jnp.zeros_like(h_sc)
        c_sc[...] = jnp.zeros_like(c_sc)

    Bs, H = h_sc.shape
    t_chunk = out_ref.shape[-1]

    wp = wp_ref[...]                                               # (1, H) - 1 vreg
    lane_iota = jax.lax.broadcasted_iota(jnp.int32, (Bs, t_chunk), 1)

    def step(i, carry):
        h, c, scores = carry
        # Only the recurrent matmul lives in the loop; input projection is hoisted.
        gates = xp_ref[i] + jnp.dot(h, whh_ref[...],
                                    preferred_element_type=jnp.float32)   # (Bs, 4H)
        i_g = jax.nn.sigmoid(gates[:, 0:H])
        f_g = jax.nn.sigmoid(gates[:, H:2 * H])
        g_g = jnp.tanh(gates[:, 2 * H:3 * H])
        o_g = jax.nn.sigmoid(gates[:, 3 * H:4 * H])
        c = f_g * c + i_g * g_g
        h = o_g * jnp.tanh(c)
        # Predictor hidden-side contribution: VPU mul + cross-lane reduce (no N=1 MXU op).
        s = jnp.sum(h * wp, axis=-1, keepdims=True)                # (Bs, 1)
        # Scatter into lane i of the lane-dense score slab via a cheap select.
        scores = jnp.where(lane_iota == i, s, scores)
        return h, c, scores

    carry0 = (h_sc[...], c_sc[...], jnp.zeros((Bs, t_chunk), jnp.float32))
    h, c, scores = jax.lax.fori_loop(0, t_chunk, step, carry0)
    h_sc[...] = h
    c_sc[...] = c
    # One lane-dense store per chunk: sigmoid(h.wp + q.wq + b).
    out_ref[...] = jax.nn.sigmoid(scores + qc_ref[...])


def _dkt_lstm_pallas(x_proj_tm, q_contrib, w_hh, wp_row, *, t_chunk, batch_shards):
    """x_proj_tm: (T_pad, B, 4H), q_contrib: (B, T_pad) -> scores (B, T_pad)."""
    T_pad, B, four_h = x_proj_tm.shape
    H = w_hh.shape[0]
    assert four_h == 4 * H
    assert B % batch_shards == 0
    assert T_pad % t_chunk == 0
    Bs = B // batch_shards
    n_chunks = T_pad // t_chunk

    grid_spec = pltpu.PrefetchScalarGridSpec(
        num_scalar_prefetch=0,
        grid=(batch_shards, n_chunks),
        in_specs=[
            pl.BlockSpec((t_chunk, Bs, 4 * H), lambda b, c: (c, b, 0)),
            pl.BlockSpec((Bs, t_chunk), lambda b, c: (b, c)),
            pl.BlockSpec((H, 4 * H), lambda b, c: (0, 0)),
            pl.BlockSpec((1, H), lambda b, c: (0, 0)),
        ],
        out_specs=pl.BlockSpec((Bs, t_chunk), lambda b, c: (b, c)),
        scratch_shapes=[
            pltpu.VMEM((Bs, H), jnp.float32),   # h
            pltpu.VMEM((Bs, H), jnp.float32),   # c
        ],
    )

    return pl.pallas_call(
        _dkt_lstm_kernel,
        out_shape=jax.ShapeDtypeStruct((B, T_pad), jnp.float32),
        grid_spec=grid_spec,
        compiler_params=pltpu.CompilerParams(
            # batch shards are independent (megacore on v7x); time chunks carry state.
            dimension_semantics=("parallel", "arbitrary")),
    )(x_proj_tm, q_contrib, w_hh, wp_row)


# ----------------------------------------------------------------------------
# DKT_QUE forward: glue + hoisted big matmuls in plain JAX, recurrence in Pallas
# ----------------------------------------------------------------------------
def dkt_que_forward(params, question_seq, correct_seq, *, t_chunk=128, batch_shards=1):
    """question_seq, correct_seq: (B, S) int32.  Returns (B, S-1) predicted scores."""
    emb_table = params["question_emb"]               # (num_q, E)
    E = emb_table.shape[-1]
    B, S = correct_seq.shape
    T = S - 1

    # KTEmbedLayer2.get_emb('question', ...)
    q_emb = emb_table[question_seq]                  # (B, S, E)
    correct_emb = jnp.broadcast_to(
        correct_seq.astype(jnp.float32)[..., None], (B, S, E))
    interaction = jnp.concatenate(
        [q_emb[:, :-1], correct_emb[:, :-1]], axis=-1)              # (B, T, 2E)

    # Hoisted out of the recurrence: one big MXU-friendly matmul each.
    x_proj = interaction @ params["w_ih"] + params["b_gates"]       # (B, T, 4H)
    q_contrib = (q_emb[:, 1:] @ params["w_pred_q"]
                 + params["b_pred"])[..., 0]                        # (B, T)

    # Pad the time axis so each grid step handles a lane-dense t_chunk slab.
    T_pad = ((T + t_chunk - 1) // t_chunk) * t_chunk
    if T_pad != T:
        x_proj = jnp.pad(x_proj, ((0, 0), (0, T_pad - T), (0, 0)))
        q_contrib = jnp.pad(q_contrib, ((0, 0), (0, T_pad - T)))

    x_proj_tm = jnp.transpose(x_proj, (1, 0, 2))                    # (T_pad, B, 4H)
    wp_row = params["w_pred_h"].reshape(1, -1)                      # (1, H)

    scores = _dkt_lstm_pallas(
        x_proj_tm, q_contrib, params["w_hh"], wp_row,
        t_chunk=t_chunk, batch_shards=batch_shards)                 # (B, T_pad)
    return scores[:, :T]


# ----------------------------------------------------------------------------
# Pure-JAX reference (for correctness check)
# ----------------------------------------------------------------------------
def dkt_que_reference(params, question_seq, correct_seq):
    emb_table = params["question_emb"]
    E = emb_table.shape[-1]
    H = params["w_hh"].shape[0]
    B, S = correct_seq.shape

    q_emb = emb_table[question_seq]
    correct_emb = jnp.broadcast_to(
        correct_seq.astype(jnp.float32)[..., None], (B, S, E))
    interaction = jnp.concatenate([q_emb[:, :-1], correct_emb[:, :-1]], axis=-1)

    def step(carry, x_t):
        h, c = carry
        gates = x_t @ params["w_ih"] + h @ params["w_hh"] + params["b_gates"]
        i_g = jax.nn.sigmoid(gates[:, 0:H])
        f_g = jax.nn.sigmoid(gates[:, H:2 * H])
        g_g = jnp.tanh(gates[:, 2 * H:3 * H])
        o_g = jax.nn.sigmoid(gates[:, 3 * H:4 * H])
        c = f_g * c + i_g * g_g
        h = o_g * jnp.tanh(c)
        return (h, c), h

    init = (jnp.zeros((B, H), jnp.float32), jnp.zeros((B, H), jnp.float32))
    _, latent_tm = jax.lax.scan(step, init, jnp.transpose(interaction, (1, 0, 2)))
    latent = jnp.transpose(latent_tm, (1, 0, 2))          # (B, T, H)

    logit = (latent @ params["w_pred_h"]
             + q_emb[:, 1:] @ params["w_pred_q"]
             + params["b_pred"])
    return jax.nn.sigmoid(logit)[..., 0]


# ----------------------------------------------------------------------------
# Deterministic parameter init (synthetic, no checkpoint)
# ----------------------------------------------------------------------------
def init_params(key, num_question, dim_emb, dim_latent):
    ks = jax.random.split(key, 7)
    scale = 0.1
    return {
        "question_emb": scale * jax.random.normal(ks[0], (num_question, dim_emb), jnp.float32),
        "w_ih": scale * jax.random.normal(ks[1], (2 * dim_emb, 4 * dim_latent), jnp.float32),
        "w_hh": scale * jax.random.normal(ks[2], (dim_latent, 4 * dim_latent), jnp.float32),
        "b_gates": scale * jax.random.normal(ks[3], (1, 4 * dim_latent), jnp.float32),
        "w_pred_h": scale * jax.random.normal(ks[4], (dim_latent, 1), jnp.float32),
        "w_pred_q": scale * jax.random.normal(ks[5], (dim_emb, 1), jnp.float32),
        "b_pred": scale * jax.random.normal(ks[6], (1, 1), jnp.float32),
    }


if __name__ == "__main__":
    dim_emb = 128
    dim_latent = 128
    num_question = 50

    key = jax.random.PRNGKey(0)
    k = jax.random.split(key, 6)

    def run_case(batch_size, seq_len, batch_shards, kpar, kq, kc):
        params = init_params(kpar, num_question, dim_emb, dim_latent)
        question_seq = jax.random.randint(kq, (batch_size, seq_len), 0, num_question, jnp.int32)
        correct_seq = jax.random.randint(kc, (batch_size, seq_len), 0, 2, jnp.int32)

        fwd = jax.jit(functools.partial(dkt_que_forward,
                                        t_chunk=128, batch_shards=batch_shards))
        out = jax.block_until_ready(fwd(params, question_seq, correct_seq))
        ref = dkt_que_reference(params, question_seq, correct_seq)

        assert out.shape == (batch_size, seq_len - 1), out.shape
        assert jnp.allclose(out, ref, rtol=1e-4, atol=1e-4), \
            f"max abs diff {jnp.max(jnp.abs(out - ref))}"

    # Case 1: small shapes (single time chunk, single batch shard).
    run_case(batch_size=8, seq_len=8, batch_shards=1, kpar=k[0], kq=k[1], kc=k[2])
    # Case 2: multi-chunk (exercises cross-chunk h/c carry) + 2 batch shards ("parallel" axis).
    run_case(batch_size=16, seq_len=200, batch_shards=2, kpar=k[3], kq=k[4], kc=k[5])

    print("KERNEL_OK")
</pallas_src>

<mosaic_0001>
module attributes {stable_mosaic.version = 11 : i64} {
  func.func @_dkt_lstm_kernel(%arg0: i32, %arg1: i32, %arg2: memref<128x8x512xf32, #tpu.memory_space<vmem>>, %arg3: memref<8x128xf32, #tpu.memory_space<vmem>>, %arg4: memref<128x512xf32, #tpu.memory_space<vmem>>, %arg5: memref<1x128xf32, #tpu.memory_space<vmem>>, %arg6: memref<8x128xf32, #tpu.memory_space<vmem>>, %arg7: memref<8x128xf32, #tpu.memory_space<vmem>>, %arg8: memref<8x128xf32, #tpu.memory_space<vmem>>) attributes {dimension_semantics = [#tpu.dimension_semantics<parallel>, #tpu.dimension_semantics<arbitrary>], iteration_bounds = array<i64: 1, 1>, scalar_prefetch = 0 : i64, scratch_operands = 2 : i64, tpu.core_type = #tpu.core_type<tc>, window_params = [{transform_indices = @transform_0, window_bounds = array<i64: 128, 8, 512>}, {transform_indices = @transform_1, window_bounds = array<i64: 8, 128>}, {pipeline_mode = #tpu.pipeline_mode<synchronous>, transform_indices = @transform_2, window_bounds = array<i64: 128, 512>}, {pipeline_mode = #tpu.pipeline_mode<synchronous>, transform_indices = @transform_3, window_bounds = array<i64: 1, 128>}, {transform_indices = @transform_4, window_bounds = array<i64: 8, 128>}]} {
    %c0_i32 = arith.constant 0 : i32
    %0 = arith.cmpi eq, %arg1, %c0_i32 : i32
    %1 = arith.extui %0 : i1 to i32
    %c0_i32_0 = arith.constant 0 : i32
    %2 = arith.cmpi ne, %1, %c0_i32_0 : i32
    scf.if %2 {
      %cst_17 = arith.constant 0.000000e+00 : f32
      %20 = vector.broadcast %cst_17 : f32 to vector<8x128xf32>
      %c0_18 = arith.constant 0 : index
      %c0_19 = arith.constant 0 : index
      %21 = vector.load %arg7[%c0_18, %c0_19] : memref<8x128xf32, #tpu.memory_space<vmem>>, vector<8x128xf32>
      tpu.vector_store %arg7[%c0_18, %c0_19], %20 {strides = array<i32>} : memref<8x128xf32, #tpu.memory_space<vmem>>, vector<8x128xf32>,
      %cst_20 = arith.constant 0.000000e+00 : f32
      %22 = vector.broadcast %cst_20 : f32 to vector<8x128xf32>
      %c0_21 = arith.constant 0 : index
      %c0_22 = arith.constant 0 : index
      %23 = vector.load %arg8[%c0_21, %c0_22] : memref<8x128xf32, #tpu.memory_space<vmem>>, vector<8x128xf32>
      tpu.vector_store %arg8[%c0_21, %c0_22], %22 {strides = array<i32>} : memref<8x128xf32, #tpu.memory_space<vmem>>, vector<8x128xf32>,
    } else {
    }
    %c0 = arith.constant 0 : index
    %c0_1 = arith.constant 0 : index
    %3 = vector.load %arg5[%c0, %c0_1] : memref<1x128xf32, #tpu.memory_space<vmem>>, vector<1x128xf32>
    %4 = tpu.iota {dimensions = array<i32: 1>} : vector<8x128xi32>
    %c0_2 = arith.constant 0 : index
    %c0_3 = arith.constant 0 : index
    %5 = vector.load %arg7[%c0_2, %c0_3] : memref<8x128xf32, #tpu.memory_space<vmem>>, vector<8x128xf32>
    %c0_4 = arith.constant 0 : index
    %c0_5 = arith.constant 0 : index
    %6 = vector.load %arg8[%c0_4, %c0_5] : memref<8x128xf32, #tpu.memory_space<vmem>>, vector<8x128xf32>
    %cst = arith.constant 0.000000e+00 : f32
    %7 = vector.broadcast %cst : f32 to vector<8x128xf32>
    %c0_i32_6 = arith.constant 0 : i32
    %c128_i32 = arith.constant 128 : i32
    %8 = arith.addi %c0_i32_6, %c128_i32 : i32
    %c1_i32 = arith.constant 1 : i32
    %9:3 = scf.for %arg9 = %c0_i32_6 to %8 step %c1_i32 iter_args(%arg10 = %5, %arg11 = %6, %arg12 = %7) -> (vector<8x128xf32>, vector<8x128xf32>, vector<8x128xf32>)  : i32 {
      %20 = arith.index_cast %arg9 : i32 to index
      %c0_17 = arith.constant 0 : index
      %c0_18 = arith.constant 0 : index
      %21 = vector.load %arg2[%20, %c0_17, %c0_18] : memref<128x8x512xf32, #tpu.memory_space<vmem>>, vector<1x8x512xf32>
      %22 = vector.shape_cast %21 : vector<1x8x512xf32> to vector<8x512xf32>
      %c0_19 = arith.constant 0 : index
      %c0_20 = arith.constant 0 : index
      %23 = vector.load %arg4[%c0_19, %c0_20] : memref<128x512xf32, #tpu.memory_space<vmem>>, vector<128x512xf32>
      %cst_21 = arith.constant dense<0.000000e+00> : vector<8x512xf32>
      %24 = tpu.matmul %arg10, %23, %cst_21 {dimension_numbers = #tpu.dot_dimension_numbers<[1], [0], [0], [1], [0, 0, 1, 1], [], []>} : vector<8x128xf32>, vector<128x512xf32>, vector<8x512xf32> -> vector<8x512xf32>
      %25 = arith.addf %22, %24 : vector<8x512xf32>
      %26 = vector.extract_strided_slice %25 {offsets = [0, 0], sizes = [8, 128], strides = [1, 1]} : vector<8x512xf32> to vector<8x128xf32>
      %27 = arith.negf %26 : vector<8x128xf32>
      %28 = math.exp %27 : vector<8x128xf32>
      %cst_22 = arith.constant 1.000000e+00 : f32
      %29 = vector.broadcast %cst_22 : f32 to vector<8x128xf32>
      %30 = arith.addf %29, %28 : vector<8x128xf32>
      %31 = arith.divf %29, %30 : vector<8x128xf32>
      %32 = vector.extract_strided_slice %25 {offsets = [0, 128], sizes = [8, 128], strides = [1, 1]} : vector<8x512xf32> to vector<8x128xf32>
      %33 = arith.negf %32 : vector<8x128xf32>
      %34 = math.exp %33 : vector<8x128xf32>
      %cst_23 = arith.constant 1.000000e+00 : f32
      %35 = vector.broadcast %cst_23 : f32 to vector<8x128xf32>
      %36 = arith.addf %35, %34 : vector<8x128xf32>
      %37 = arith.divf %35, %36 : vector<8x128xf32>
      %38 = vector.extract_strided_slice %25 {offsets = [0, 256], sizes = [8, 128], strides = [1, 1]} : vector<8x512xf32> to vector<8x128xf32>
      %39 = math.tanh %38 : vector<8x128xf32>
      %40 = vector.extract_strided_slice %25 {offsets = [0, 384], sizes = [8, 128], strides = [1, 1]} : vector<8x512xf32> to vector<8x128xf32>
      %41 = arith.negf %40 : vector<8x128xf32>
      %42 = math.exp %41 : vector<8x128xf32>
      %cst_24 = arith.constant 1.000000e+00 : f32
      %43 = vector.broadcast %cst_24 : f32 to vector<8x128xf32>
      %44 = arith.addf %43, %42 : vector<8x128xf32>
      %45 = arith.divf %43, %44 : vector<8x128xf32>
      %46 = arith.mulf %37, %arg11 : vector<8x128xf32>
      %47 = arith.mulf %31, %39 : vector<8x128xf32>
      %48 = arith.addf %46, %47 : vector<8x128xf32>
      %49 = math.tanh %48 : vector<8x128xf32>
      %50 = arith.mulf %45, %49 : vector<8x128xf32>
      %51 = vector.broadcast %3 : vector<1x128xf32> to vector<8x128xf32>
      %52 = arith.mulf %50, %51 : vector<8x128xf32>
      %cst_25 = arith.constant dense<0.000000e+00> : vector<8xf32>
      %53 = vector.multi_reduction <add>, %52, %cst_25 [1] : vector<8x128xf32> to vector<8xf32>
      %54 = vector.shape_cast %53 : vector<8xf32> to vector<8x1xf32>
      %55 = vector.broadcast %arg9 : i32 to vector<8x128xi32>
      %56 = arith.cmpi eq, %4, %55 : vector<8x128xi32>
      %57 = vector.shape_cast %54 : vector<8x1xf32> to vector<8x1xf32>
      %58 = vector.broadcast %57 : vector<8x1xf32> to vector<8x128xf32>
      %59 = arith.select %56, %58, %arg12 : vector<8x128xi1>, vector<8x128xf32>
      scf.yield %50, %48, %59 : vector<8x128xf32>, vector<8x128xf32>, vector<8x128xf32>
    }
    %c128_i32_7 = arith.constant 128 : i32
    %c0_8 = arith.constant 0 : index
    %c0_9 = arith.constant 0 : index
    %10 = vector.load %arg7[%c0_8, %c0_9] : memref<8x128xf32, #tpu.memory_space<vmem>>, vector<8x128xf32>
    tpu.vector_store %arg7[%c0_8, %c0_9], %9#0 {strides = array<i32>} : memref<8x128xf32, #tpu.memory_space<vmem>>, vector<8x128xf32>,
    %c0_10 = arith.constant 0 : index
    %c0_11 = arith.constant 0 : index
    %11 = vector.load %arg8[%c0_10, %c0_11] : memref<8x128xf32, #tpu.memory_space<vmem>>, vector<8x128xf32>
    tpu.vector_store %arg8[%c0_10, %c0_11], %9#1 {strides = array<i32>} : memref<8x128xf32, #tpu.memory_space<vmem>>, vector<8x128xf32>,
    %c0_12 = arith.constant 0 : index
    %c0_13 = arith.constant 0 : index
    %12 = vector.load %arg3[%c0_12, %c0_13] : memref<8x128xf32, #tpu.memory_space<vmem>>, vector<8x128xf32>
    %13 = arith.addf %9#2, %12 : vector<8x128xf32>
    %14 = arith.negf %13 : vector<8x128xf32>
    %15 = math.exp %14 : vector<8x128xf32>
    %cst_14 = arith.constant 1.000000e+00 : f32
    %16 = vector.broadcast %cst_14 : f32 to vector<8x128xf32>
    %17 = arith.addf %16, %15 : vector<8x128xf32>
    %18 = arith.divf %16, %17 : vector<8x128xf32>
    %c0_15 = arith.constant 0 : index
    %c0_16 = arith.constant 0 : index
    %19 = vector.load %arg6[%c0_15, %c0_16] : memref<8x128xf32, #tpu.memory_space<vmem>>, vector<8x128xf32>
    tpu.vector_store %arg6[%c0_15, %c0_16], %18 {strides = array<i32>} : memref<8x128xf32, #tpu.memory_space<vmem>>, vector<8x128xf32>,
    return
  }
  func.func @transform_0(%arg0: i32, %arg1: i32) -> (i32, i32, i32) {
    %c0_i32 = arith.constant 0 : i32
    %c0_i32_0 = arith.constant 0 : i32
    return %arg1, %arg0, %c0_i32 : i32, i32, i32
  }
  func.func @transform_1(%arg0: i32, %arg1: i32) -> (i32, i32) {
    %c0_i32 = arith.constant 0 : i32
    return %arg0, %arg1 : i32, i32
  }
  func.func @transform_2(%arg0: i32, %arg1: i32) -> (i32, i32) {
    %c0_i32 = arith.constant 0 : i32
    %c0_i32_0 = arith.constant 0 : i32
    %c0_i32_1 = arith.constant 0 : i32
    return %c0_i32, %c0_i32_0 : i32, i32
  }
  func.func @transform_3(%arg0: i32, %arg1: i32) -> (i32, i32) {
    %c0_i32 = arith.constant 0 : i32
    %c0_i32_0 = arith.constant 0 : i32
    %c0_i32_1 = arith.constant 0 : i32
    return %c0_i32, %c0_i32_0 : i32, i32
  }
  func.func @transform_4(%arg0: i32, %arg1: i32) -> (i32, i32) {
    %c0_i32 = arith.constant 0 : i32
    return %arg0, %arg1 : i32, i32
  }
}

</mosaic_0001>

<bundles_post_ra>
// kernel: dkt_que_forward.1
= control target key start
LH: loop header
LB: loop body
LE: loop exit
PB: predicated region body
PF: predicated region fallthrough
CT: control target
= control target key end

     0   :  { %9 = vsyncpa [#allocation5], 0  ;;  %v25_v1 = vlaneseq  ;;  %v549_v3 = vmov 0.0   ;;  %v551_v4 = vmov 0.0   ;;  %v553_v5 = vmov 0.0   ;;  %s555_s17 = smov 0   ;;  %s796_s0 = inlined_call_operand.vmem [shape: f32[128,8,512], index: 0, kind: input, shape index: {}]   ;;  %s797_s1 = inlined_call_operand.vmem [shape: f32[8,128], index: 1, kind: input, shape index: {}]   ;;  %s798_s2 = inlined_call_operand.vmem [shape: f32[128,512], index: 2, kind: input, shape index: {}]   ;;  %s799_s3 = inlined_call_operand.vmem [shape: f32[1,128], index: 3, kind: input, shape index: {}]   ;;  %s800_s4 = inlined_call_operand.hbm [shape: f32[8,128], index: 4, kind: output, shape index: {}]  }
   0x1   :  { %v545_v0 = vld [vmem:[%s799_s3] ss:$0 sm:$0xff] }
   0x2   :  { %v547_v2 = vand.u32 127, %v25_v1 }
   0x3 LB: > { %v46_v6 = vld [vmem:[%s798_s2 + $0x8] sm:$0xff]  ;;  %v45_v8 = vld [vmem:[%s798_s2] sm:$0xff]  ;;  %v515_v13 = vmov 0.0   ;;  %v48_v25 = vld [vmem:[%s798_s2 + $0x18] sm:$0xff]  ;;  %s339_s15 = sshll.u32 %s513_s17, 5  ;;  %s513_s17 = sphi %s555_s17, %s34_s17   ;;  %v509_v5 = vphi %v553_v5, %v278_v5   ;;  %v505_v4 = vphi %v551_v4, %v276_v4   ;;  %v501_v3 = vphi %v549_v3, %v801_v3  }
   0x4   : > { %v50_v7 = vld [vmem:[%s798_s2 + $0x28] sm:$0xff]  ;;  %v49_v10 = vld [vmem:[%s798_s2 + $0x20] sm:$0xff]  ;;  %173 = vmatprep.mubr.f32.mxu0 %v515_v13  ;;  %244 = vmatprep.mubr.f32.mxu1 %v515_v13  ;;  %v52_v26 = vld [vmem:[%s798_s2 + $0x38] sm:$0xff]  ;;  %s40_s18 = scalar_lea.vmem %s796_s0, %s339_s15 }
   0x5   : > { %v340_v9 = vpack.c.bf16 %v50_v7, %v46_v6  ;;  %v54_v11 = vld [vmem:[%s798_s2 + $0x48] sm:$0xff]  ;;  %v342_v14 = vpack.c.bf16 %v49_v10, %v45_v8  ;;  %v53_v16 = vld [vmem:[%s798_s2 + $0x40] sm:$0xff]  ;;  %v372_v28 = vpack.c.bf16 %v52_v26, %v48_v25  ;;  %v47_v29 = vld [vmem:[%s798_s2 + $0x10] sm:$0xff] }
   0x6   : > { %v58_v12 = vld [vmem:[%s798_s2 + $0x68] sm:$0xff]  ;;  %v57_v17 = vld [vmem:[%s798_s2 + $0x60] sm:$0xff]  ;;  %v51_v30 = vld [vmem:[%s798_s2 + $0x30] sm:$0xff] }
   0x7   : > { %v344_v15 = vpack.c.bf16 %v58_v12, %v54_v11  ;;  %v62_v18 = vld [vmem:[%s798_s2 + $0x88] sm:$0xff]  ;;  %341 = vmatprep.subr.bf16.mxu0 %v340_v9  ;;  %v346_v20 = vpack.c.bf16 %v57_v17, %v53_v16  ;;  %v61_v21 = vld [vmem:[%s798_s2 + $0x80] sm:$0xff]  ;;  %v374_v31 = vpack.c.bf16 %v51_v30, %v47_v29  ;;  %373 = vmatprep.subr.bf16.mxu1 %v372_v28  ;;  %v56_v33 = vld [vmem:[%s798_s2 + $0x58] sm:$0xff] }
   0x8   : > { %v66_v19 = vld [vmem:[%s798_s2 + $0xa8] sm:$0xff]  ;;  %343 = vmatpush1.bf16.msra.mxu0 %v342_v14  ;;  %v65_v22 = vld [vmem:[%s798_s2 + $0xa0] sm:$0xff]  ;;  %v60_v34 = vld [vmem:[%s798_s2 + $0x78] sm:$0xff] }
   0x9   : > { %345 = vmatprep.subr.bf16.mxu0 %v344_v15  ;;  %v348_v23 = vpack.c.bf16 %v66_v19, %v62_v18  ;;  %v70_v24 = vld [vmem:[%s798_s2 + $0xc8] sm:$0xff]  ;;  %v350_v32 = vpack.c.bf16 %v65_v22, %v61_v21  ;;  %v55_v35 = vld [vmem:[%s798_s2 + $0x50] sm:$0xff]  ;;  %v69_v37 = vld [vmem:[%s798_s2 + $0xc0] sm:$0xff]  ;;  %375 = vmatpush1.bf16.msra.mxu1 %v374_v31  ;;  %v376_v39 = vpack.c.bf16 %v60_v34, %v56_v33 }
   0xa   : > { %v74_v27 = vld [vmem:[%s798_s2 + $0xe8] sm:$0xff]  ;;  %v73_v38 = vld [vmem:[%s798_s2 + $0xe0] sm:$0xff]  ;;  %v59_v40 = vld [vmem:[%s798_s2 + $0x70] sm:$0xff] }
   0xb   : > { %v352_v36 = vpack.c.bf16 %v74_v27, %v70_v24  ;;  %v78_v41 = vld [vmem:[%s798_s2 + $0x108] sm:$0xff]  ;;  %v378_v43 = vpack.c.bf16 %v59_v40, %v55_v35  ;;  %v64_v44 = vld [vmem:[%s798_s2 + $0x98] sm:$0xff]  ;;  %377 = vmatprep.subr.bf16.mxu1 %v376_v39  ;;  %v63_v46 = vld [vmem:[%s798_s2 + $0x90] sm:$0xff]  ;;  %v354_v48 = vpack.c.bf16 %v73_v38, %v69_v37 }
   0xc   : > { %347 = vmatpush1.bf16.msra.mxu0 %v346_v20  ;;  %v82_v42 = vld [vmem:[%s798_s2 + $0x128] sm:$0xff]  ;;  %v68_v45 = vld [vmem:[%s798_s2 + $0xb8] sm:$0xff]  ;;  %v67_v47 = vld [vmem:[%s798_s2 + $0xb0] sm:$0xff] }
   0xd   : > { %349 = vmatprep.subr.bf16.mxu0 %v348_v23  ;;  %v77_v49 = vld [vmem:[%s798_s2 + $0x100] sm:$0xff]  ;;  %v380_v51 = vpack.c.bf16 %v68_v45, %v64_v44  ;;  %v356_v52 = vpack.c.bf16 %v82_v42, %v78_v41  ;;  %379 = vmatpush1.bf16.msra.mxu1 %v378_v43  ;;  %v86_v53 = vld [vmem:[%s798_s2 + $0x148] sm:$0xff]  ;;  %v382_v54 = vpack.c.bf16 %v67_v47, %v63_v46  ;;  %v72_v55 = vld [vmem:[%s798_s2 + $0xd8] sm:$0xff] }
   0xe   : > { %v81_v50 = vld [vmem:[%s798_s2 + $0x120] sm:$0xff]  ;;  %v76_v56 = vld [vmem:[%s798_s2 + $0xf8] sm:$0xff]  ;;  %v90_v57 = vld [vmem:[%s798_s2 + $0x168] sm:$0xff] }
   0xf   : > { %381 = vmatprep.subr.bf16.mxu1 %v380_v51  ;;  %v384_v58 = vpack.c.bf16 %v76_v56, %v72_v55  ;;  %v71_v59 = vld [vmem:[%s798_s2 + $0xd0] sm:$0xff]  ;;  %v358_v61 = vpack.c.bf16 %v81_v50, %v77_v49  ;;  %v80_v62 = vld [vmem:[%s798_s2 + $0x118] sm:$0xff]  ;;  %v360_v1 = vpack.c.bf16 %v90_v57, %v86_v53  ;;  %v85_v6 = vld [vmem:[%s798_s2 + $0x140] sm:$0xff] }
  0x10   : > { %351 = vmatpush1.bf16.msra.mxu0 %v350_v32  ;;  %v75_v60 = vld [vmem:[%s798_s2 + $0xf0] sm:$0xff]  ;;  %v84_v63 = vld [vmem:[%s798_s2 + $0x138] sm:$0xff]  ;;  %v89_v7 = vld [vmem:[%s798_s2 + $0x160] sm:$0xff] }
  0x11   : > { %353 = vmatprep.subr.bf16.mxu0 %v352_v36  ;;  %383 = vmatpush1.bf16.msra.mxu1 %v382_v54  ;;  %v94_v8 = vld [vmem:[%s798_s2 + $0x188] sm:$0xff]  ;;  %v386_v9 = vpack.c.bf16 %v75_v60, %v71_v59  ;;  %v388_v11 = vpack.c.bf16 %v84_v63, %v80_v62  ;;  %v79_v12 = vld [vmem:[%s798_s2 + $0x110] sm:$0xff]  ;;  %v88_v14 = vld [vmem:[%s798_s2 + $0x158] sm:$0xff]  ;;  %v362_v16 = vpack.c.bf16 %v89_v7, %v85_v6 }
  0x12   : > { %v98_v10 = vld [vmem:[%s798_s2 + $0x1a8] sm:$0xff]  ;;  %385 = vmatprep.subr.bf16.mxu1 %v384_v58  ;;  %v83_v13 = vld [vmem:[%s798_s2 + $0x130] sm:$0xff]  ;;  %v92_v15 = vld [vmem:[%s798_s2 + $0x178] sm:$0xff] }
  0x13   : > { %v364_v17 = vpack.c.bf16 %v98_v10, %v94_v8  ;;  %v93_v18 = vld [vmem:[%s798_s2 + $0x180] sm:$0xff]  ;;  %v102_v20 = vld [vmem:[%s798_s2 + $0x1c8] sm:$0xff]  ;;  %v390_v21 = vpack.c.bf16 %v83_v13, %v79_v12  ;;  %v392_v23 = vpack.c.bf16 %v92_v15, %v88_v14  ;;  %v87_v24 = vld [vmem:[%s798_s2 + $0x150] sm:$0xff]  ;;  %v288_v13 = vstv %s513_s17  ;;  %s34_s17 = sadd.s32 1, %s513_s17  }
  0x14   : > { %355 = vmatpush1.bf16.msra.mxu0 %v354_v48  ;;  %v97_v19 = vld [vmem:[%s798_s2 + $0x1a0] sm:$0xff]  ;;  %v106_v22 = vld [vmem:[%s798_s2 + $0x1e8] sm:$0xff]  ;;  %v91_v25 = vld [vmem:[%s798_s2 + $0x170] sm:$0xff]  ;;  %vm289_vm0 = vcmp.eq.s32.totalorder %v547_v2, %v288_v13  ;;  %p31_p0 = scmp.ge.s32.totalorder %s34_s17, 128  }
  0x15   : > { %357 = vmatprep.subr.bf16.mxu0 %v356_v52  ;;  %387 = vmatpush1.bf16.msra.mxu1 %v386_v9  ;;  %v96_v26 = vld [vmem:[%s798_s2 + $0x198] sm:$0xff]  ;;  %v366_v28 = vpack.c.bf16 %v97_v19, %v93_v18  ;;  %v368_v29 = vpack.c.bf16 %v106_v22, %v102_v20  ;;  %v101_v30 = vld [vmem:[%s798_s2 + $0x1c0] sm:$0xff]  ;;  %v394_v32 = vpack.c.bf16 %v91_v25, %v87_v24  ;;  %v95_v34 = vld [vmem:[%s798_s2 + $0x190] sm:$0xff]  ;;  %s516_s21 = smov (%p31_p0), [#allocation4]  }
  0x16   : > { %389 = vmatprep.subr.bf16.mxu1 %v388_v11  ;;  %v100_v27 = vld [vmem:[%s798_s2 + $0x1b8] sm:$0xff]  ;;  %v105_v31 = vld [vmem:[%s798_s2 + $0x1e0] sm:$0xff]  ;;  %v99_v35 = vld [vmem:[%s798_s2 + $0x1b0] sm:$0xff]  ;;  %s308_s22 = sshll.u32 (%p31_p0), %s516_s21, 4  ;;  %s309_s22 = int_to_ptr.vmem [resolvable:$true] %s308_s22 }
  0x17   : > { %v396_v33 = vpack.c.bf16 %v100_v27, %v96_v26  ;;  %v104_v36 = vld [vmem:[%s798_s2 + $0x1d8] sm:$0xff]  ;;  %v370_v38 = vpack.c.bf16 %v105_v31, %v101_v30  ;;  %v398_v39 = vpack.c.bf16 %v99_v35, %v95_v34  ;;  %v103_v41 = vld [vmem:[%s798_s2 + $0x1d0] sm:$0xff]  ;;  %v41_v44 = vld [vmem:[%s40_s18] sm:$0xff]  ;;  %s459_s23 = scalar_lea.vmem (%p31_p0), %s309_s22, 128  ;;  %p464_p2 = scmp.lt.s32.totalorder (%p31_p0), %s309_s22, %s309_s22 }
  0x18   : > { %359 = vmatpush1.bf16.msra.mxu0 %v358_v61  ;;  %v108_v37 = vld [vmem:[%s798_s2 + $0x1f8] sm:$0xff]  ;;  %v107_v42 = vld [vmem:[%s798_s2 + $0x1f0] sm:$0xff]  ;;  %v42_v45 = vld [vmem:[%s40_s18 + $0x8] sm:$0xff]  ;;  %p460_p1 = scmp.ne.s32.totalorder (%p31_p0), %s309_s22, %s459_s23  ;;  %p465_p3 = scmp.lt.s32.totalorder (%p31_p0), %s459_s23, %s459_s23 }
  0x19   : > { %361 = vmatprep.subr.bf16.mxu0 %v360_v1  ;;  %391 = vmatpush1.bf16.msra.mxu1 %v390_v21  ;;  %v400_v40 = vpack.c.bf16 %v108_v37, %v104_v36  ;;  %v402_v43 = vpack.c.bf16 %v107_v42, %v103_v41  ;;  %v44_v52 = vld [vmem:[%s40_s18 + $0x18] sm:$0xff] }
  0x1a   : > { %393 = vmatprep.subr.bf16.mxu1 %v392_v23  ;;  %p466_p4 = por (%p31_p0), %p465_p3, %p464_p2 }
  0x1c   : > { %363 = vmatpush1.bf16.msra.mxu0 %v362_v16  ;;  %v293_v16 = vld [vmem:[%s797_s1] sm:$0xff] (%p31_p0)  ;;  %p467_p5 = pnand (%p31_p0), %p466_p4, %p460_p1 }
  0x1d   : > { %365 = vmatprep.subr.bf16.mxu0 %v364_v17  ;;  %395 = vmatpush1.bf16.msra.mxu1 %v394_v32 }
  0x1e   : > { %397 = vmatprep.subr.bf16.mxu1 %v396_v33 }
  0x20   : > { %367 = vmatpush1.bf16.msra.mxu0 %v366_v28 }
  0x21   : > { %369 = vmatprep.subr.bf16.mxu0 %v368_v29  ;;  %399 = vmatpush1.bf16.msra.mxu1 %v398_v39 }
  0x22   : > { %401 = vmatprep.subr.bf16.mxu1 %v400_v40 }
  0x24   : > { %371 = vmatpush1.bf16.msra.mxu0 %v370_v38 }
  0x25   : > { %403 = vmatpush1.bf16.msra.mxu1 %v402_v43 }
  0x27   : > { %174 = vmatmul.mubr.f32.vlgmr.msra.gmra.mrb[0].mxu0 %v509_v5 }
  0x28   : > { %245 = vmatmul.mubr.f32.vlgmr.msra.gmra.mrb[0].mxu1 %v509_v5  ;;  %v43_v5 = vld [vmem:[%s40_s18 + $0x10] sm:$0xff] }
  0xfa   : > { %v175_v46 = vpop.f32.mrb[0].mxu0 }
  0xfb   : > { %v251_v47 = vadd.f32 %v175_v46, %v41_v44  ;;  %v177_v48 = vpop.f32.mrb[1].mxu0  ;;  %v246_v53 = vpop.f32.mrb[0].mxu1 }
  0xfc   : > { %v252_v49 = vadd.f32 %v177_v48, %v42_v45  ;;  %v248_v54 = vpop.f32.mrb[1].mxu1  ;;  %v253_v57 = vadd.f32 %v246_v53, %v43_v5 }
  0xfd   : > { %v334_v50 = vmul.f32 -1.442695, %v251_v47  ;;  %v254_v55 = vadd.f32 %v248_v54, %v44_v52 }
  0xfe   : > { %v335_v51 = vmul.f32 -1.442695, %v252_v49 }
  0xff   : > { %439 = vpow2.f32 %v334_v50  ;;  %v336_v56 = vmul.f32 -1.442695, %v254_v55 }
 0x100   : > { %441 = vpow2.f32 %v335_v51 }
 0x101   : > { %443 = vpow2.f32 %v336_v56 }
 0x102   : > { %445 = vtanh.f32 %v253_v57 }
 0x109   : > { %v440_v58 = vpop.eup %439 }
 0x10a   : > { %v442_v59 = vpop.eup %441  ;;  %v258_v60 = vadd.f32 1.0, %v440_v58 }
 0x10b   : > { %v264_v61 = vadd.f32 1.0, %v442_v59  ;;  %v444_v62 = vpop.eup %443 }
 0x10c   : > { %447 = vrcp.f32 %v258_v60  ;;  %v446_v63 = vpop.eup %445  ;;  %v271_v6 = vadd.f32 1.0, %v444_v62 }
 0x10d   : > { %449 = vrcp.f32 %v264_v61 }
 0x10e   : > { %451 = vrcp.f32 %v271_v6 }
 0x116   : > { %v448_v1 = vpop.eup %447 }
 0x117   : > { %v450_v7 = vpop.eup %449  ;;  %v275_v8 = vmul.f32 %v448_v1, %v446_v63 }
 0x118   : > { %v274_v9 = vmul.f32 %v505_v4, %v450_v7  ;;  %v452_v10 = vpop.eup %451 }
 0x11a   : > { %v276_v4 = vadd.f32 %v275_v8, %v274_v9  }
 0x11c   : > { %453 = vtanh.f32 %v276_v4 }
 0x126   : > { %v454_v11 = vpop.eup %453 }
 0x127   : > { %v278_v5 = vmul.f32 %v454_v11, %v452_v10  }
 0x129   : > { %v285_v12 = vmul.f32 %v545_v0, %v278_v5 }
 0x12b   : > { %286 = vadd.xlane.f32.xlu0 %v285_v12 }
 0x1b4   :  { %33 = sbr.rel (!%p31_p0) target bundleno = 3 (0x3), region = 48 }
 0x1b8   : > { %v287_v14 = vpop.xlane.xlu0 %286 }
 0x1b9   : > { %v290_v15 = vsel %vm289_vm0, %v287_v14, %v501_v3  }
 0x1ba   : > { %v801_v3 = vmov %v290_v15  ;;  %v294_v17 = vadd.f32 (%p31_p0), %v293_v16, %v290_v15 }
 0x1bc   :  { %v338_v18 = vmul.f32 -1.442695, %v294_v17 }
 0x1be   :  { %455 = vpow2.f32 %v338_v18 }
 0x1c8   :  { %v456_v19 = vpop.eup %455 }
 0x1c9   :  { %v298_v20 = vadd.f32 1.0, %v456_v19 }
 0x1cb   :  { %457 = vrcp.f32 %v298_v20 }
 0x1d5   :  { %v458_v21 = vpop.eup %457 }
 0x1d6   :  { %301 = vst [vmem:[#allocation4] sm:$0xff] %v458_v21 }
 0x1d7   :  { %470 = shalt.err (!%p467_p5)
}
 0x1d8   :  { %s471_s2 = scalar_lea.hbm %s800_s4, 128 }
 0x1d9   :  { %p472_p6 = scmp.ne.s32.totalorder %s800_s4, %s471_s2  ;;  %p475_p7 = scmp.lt.u32.totalorder %s471_s2, %s800_s4 }
 0x1db   :  { %p477_p8 = pnand %p475_p7, %p472_p6 }
 0x1dd   :  { %480 = shalt.err (!%p477_p8)
}
 0x1de   :  { %311 = dma.vmem_to_hbm [thread:$0]  %s309_s22, 128, %s800_s4, [#allocation5]  }
 0x1df   :  { %497 = dma.done.wait [#allocation5], 128  }
 0x1e0   :  { %498 = vsyncadd [#allocation5], 4294967168 }
 0x1e1   :  { %315 = vsyncpa [#allocation5], 1 }

</bundles_post_ra>
